<compile_context>
chip_gen: v7x
topology: tpu7x:2x2x1
jax: 0.10.0
libtpu: 0.0.40
codegen_flags: <defaults>
</compile_context>

<pallas_src>
import functools

import jax
import jax.numpy as jnp
from jax.experimental import pallas as pl
from jax.experimental.pallas import tpu as pltpu


_NUM_CORES = 2                      # leading 'parallel' axis for pass 1 (v7x: 2 TCs/chip)
_SMALL_TILE_BYTES = 256 * 1024      # below this, deepen the x pipeline to Buffered(3)


def _round_up(a: int, b: int) -> int:
    return (a + b - 1) // b * b


def _vmem_capacity_bytes() -> int:
    try:
        return int(pltpu.get_tpu_info().vmem_capacity_bytes)
    except Exception:
        return 64 * 1024 * 1024     # conservative fallback (v7x per-TC physical VMEM)


# ---------------------------------------------------------------------------
# Pass 1 (tiled path): per-core partial column sums (and sum of squares).
# Grid = (core, row_tile); outputs are resident per-core accumulators.
# Ragged / out-of-range row tiles are masked in-kernel (iota vs. remaining).
# ---------------------------------------------------------------------------
def _pairnorm_reduce_kernel(x_ref, colsum_ref, gsum_ref, *,
                            tiles_per_core: int, tile_rows: int, n_rows: int,
                            compute_gsum: bool):
    c = pl.program_id(0)
    t = pl.program_id(1)

    @pl.when(t == 0)
    def _init():
        colsum_ref[...] = jnp.zeros_like(colsum_ref)
        gsum_ref[...] = jnp.zeros_like(gsum_ref)

    # True (unclamped) row-tile index this step owns.  The index_map clamps the
    # DMA to a valid tile, so tiles past the end read duplicated data; masking
    # against `remaining <= 0` zeroes their contribution.  Partial last tiles
    # keep only their valid rows (OOB rows of a partial block are unspecified).
    tile_idx = c * tiles_per_core + t
    remaining = n_rows - tile_idx * tile_rows
    row_ids = jax.lax.broadcasted_iota(jnp.int32, (tile_rows, 1), 0)
    x = jnp.where(row_ids < remaining, x_ref[...].astype(jnp.float32), 0.0)

    colsum = jnp.sum(x, axis=0, keepdims=True)                # (1, D)
    colsum_ref[...] = colsum_ref[...] + colsum[None, :, :]    # bcast over 8 sublanes
    if compute_gsum:                                          # PN only (compile-time)
        gsum_ref[...] = gsum_ref[...] + jnp.sum(x * x)


# ---------------------------------------------------------------------------
# Pass 2 (tiled path): elementwise apply per row tile (no cross-tile carry).
# ---------------------------------------------------------------------------
def _pairnorm_apply_pn_kernel(x_ref, colmean_ref, g_ref, o_ref):
    x = x_ref[...].astype(jnp.float32)
    g = g_ref[0, 0]                        # scale * rsqrt(1e-6 + var), from SMEM
    o_ref[...] = ((x - colmean_ref[...]) * g).astype(o_ref.dtype)


def _pairnorm_apply_rowwise_kernel(x_ref, colmean_ref, o_ref, *,
                                   mode: str, scale: float):
    x = x_ref[...].astype(jnp.float32)
    col_mean = colmean_ref[...]
    if mode == 'PN-SI':
        xc = x - col_mean
        inv = jax.lax.rsqrt(1e-6 + jnp.sum(xc * xc, axis=1, keepdims=True))
        out = (scale * inv) * xc
    else:  # 'PN-SCS'
        inv = jax.lax.rsqrt(1e-6 + jnp.sum(x * x, axis=1, keepdims=True))
        out = (scale * inv) * x - col_mean
    o_ref[...] = out.astype(o_ref.dtype)


# ---------------------------------------------------------------------------
# Fused single-pass kernel: whole array resident in VMEM, one HBM read.
# ---------------------------------------------------------------------------
def _pairnorm_fused_kernel(x_ref, o_ref, *, mode: str, scale: float,
                           inv_n: float):
    x = x_ref[...].astype(jnp.float32)
    col_mean = jnp.sum(x, axis=0, keepdims=True) * inv_n      # (1, D)
    if mode == 'PN':
        xc = x - col_mean
        inv = jax.lax.rsqrt(1e-6 + jnp.sum(xc * xc) * inv_n)  # exact centered sum
        out = (scale * inv) * xc
    elif mode == 'PN-SI':
        xc = x - col_mean
        inv = jax.lax.rsqrt(1e-6 + jnp.sum(xc * xc, axis=1, keepdims=True))
        out = (scale * inv) * xc
    else:  # 'PN-SCS'
        inv = jax.lax.rsqrt(1e-6 + jnp.sum(x * x, axis=1, keepdims=True))
        out = (scale * inv) * x - col_mean
    o_ref[...] = out.astype(o_ref.dtype)


# ---------------------------------------------------------------------------
# Wrapper
# ---------------------------------------------------------------------------
def pairnorm(x, mode: str = 'PN', scale: float = 1.0, block_rows=None):
    """Pallas implementation of PairNorm.forward for a 2-D (N, D) input."""
    assert mode in ['None', 'PN', 'PN-SI', 'PN-SCS']
    if mode == 'None':
        return x

    n, d = x.shape
    scale = float(scale)
    inv_n = 1.0 / float(n)

    vmem_cap = _vmem_capacity_bytes()
    vmem_limit = min(vmem_cap * 3 // 4, 96 * 1024 * 1024)

    # ---- Fused single-pass path: in + out + f32 temporaries fit in VMEM. ----
    if block_rows is None and (4 * n * d * 4) <= vmem_limit // 2:
        kernel = functools.partial(_pairnorm_fused_kernel, mode=mode,
                                   scale=scale, inv_n=inv_n)
        return pl.pallas_call(
            kernel,
            out_shape=jax.ShapeDtypeStruct((n, d), x.dtype),
            in_specs=[pl.BlockSpec(memory_space=pltpu.MemorySpace.VMEM)],
            out_specs=pl.BlockSpec(memory_space=pltpu.MemorySpace.VMEM),
            compiler_params=pltpu.CompilerParams(vmem_limit_bytes=vmem_limit),
        )(x)

    # ---- Tiled two-pass path -------------------------------------------------
    # Row tile budgeted from VMEM (~4-8 MiB); pass 2 holds 2x in + 2x out
    # buffers, so /8 leaves comfortable headroom under the scoped limit.
    tile_budget = max(1 << 20, min(8 << 20, vmem_limit // 8))
    if block_rows is not None:
        tn = max(8, _round_up(int(block_rows), 8))
    else:
        tn = max(8, (tile_budget // (d * 4)) // 8 * 8)
    tn = min(tn, _round_up(n, 8))
    num_tiles = (n + tn - 1) // tn
    tiles_per_core = (num_tiles + _NUM_CORES - 1) // _NUM_CORES

    deep = (tn * d * x.dtype.itemsize) < _SMALL_TILE_BYTES

    def x_spec(index_map):
        if deep:   # tiny tiles (user-forced): deepen pipeline to hide DMA latency
            return pl.BlockSpec((tn, d), index_map, pipeline_mode=pl.Buffered(3))
        return pl.BlockSpec((tn, d), index_map)

    # Pass 1: per-core partial reductions ("parallel" core axis, "arbitrary"
    # row-tile axis). Clamp the DMA index to a valid tile; masking inside the
    # kernel zeroes both the clamped-duplicate tiles and ragged-tile OOB rows.
    compute_gsum = (mode == 'PN')
    reduce_kernel = functools.partial(
        _pairnorm_reduce_kernel, tiles_per_core=tiles_per_core,
        tile_rows=tn, n_rows=n, compute_gsum=compute_gsum)

    def x_reduce_map(c, t):
        return (jnp.minimum(c * tiles_per_core + t, num_tiles - 1), 0)

    colsum_p, gsum_p = pl.pallas_call(
        reduce_kernel,
        out_shape=(jax.ShapeDtypeStruct((_NUM_CORES, 8, d), jnp.float32),
                   jax.ShapeDtypeStruct((_NUM_CORES, 1, 1), jnp.float32)),
        grid=(_NUM_CORES, tiles_per_core),
        in_specs=[x_spec(x_reduce_map)],
        out_specs=(pl.BlockSpec((1, 8, d), lambda c, t: (c, 0, 0)),
                   pl.BlockSpec((1, 1, 1), lambda c, t: (c, 0, 0))),
        compiler_params=pltpu.CompilerParams(
            dimension_semantics=("parallel", "arbitrary"),
            vmem_limit_bytes=vmem_limit),
    )(x)

    # Tiny O(D) epilogue in plain JAX: combine the per-core partials.
    col_mean = (jnp.sum(colsum_p[:, 0, :], axis=0) * inv_n).reshape(1, d)
    col_mean = col_mean.astype(jnp.float32)
    if compute_gsum:
        # mean_i ||x_i - mu||^2 = mean_i ||x_i||^2 - ||mu||^2   (clamped >= 0)
        mean_sq = jnp.sum(gsum_p) * inv_n
        var = jnp.maximum(mean_sq - jnp.sum(col_mean * col_mean), 0.0)
        g = (scale * jax.lax.rsqrt(1e-6 + var)).reshape(1, 1).astype(jnp.float32)

    # Pass 2: per-tile normalization; independent tiles -> "parallel".
    cp2 = pltpu.CompilerParams(dimension_semantics=("parallel",),
                               vmem_limit_bytes=vmem_limit)
    if mode == 'PN':
        out = pl.pallas_call(
            _pairnorm_apply_pn_kernel,
            out_shape=jax.ShapeDtypeStruct((n, d), x.dtype),
            grid=(num_tiles,),
            in_specs=[x_spec(lambda i: (i, 0)),
                      pl.BlockSpec((1, d), lambda i: (0, 0)),
                      pl.BlockSpec(memory_space=pltpu.MemorySpace.SMEM)],
            out_specs=pl.BlockSpec((tn, d), lambda i: (i, 0)),
            compiler_params=cp2,
        )(x, col_mean, g)
    else:
        apply_kernel = functools.partial(_pairnorm_apply_rowwise_kernel,
                                         mode=mode, scale=scale)
        out = pl.pallas_call(
            apply_kernel,
            out_shape=jax.ShapeDtypeStruct((n, d), x.dtype),
            grid=(num_tiles,),
            in_specs=[x_spec(lambda i: (i, 0)),
                      pl.BlockSpec((1, d), lambda i: (0, 0))],
            out_specs=pl.BlockSpec((tn, d), lambda i: (i, 0)),
            compiler_params=cp2,
        )(x, col_mean)
    return out


def _pairnorm_ref(x, mode: str = 'PN', scale: float = 1.0):
    """Pure-JAX reference mirroring the PyTorch forward exactly."""
    if mode == 'None':
        return x
    col_mean = x.mean(axis=0)
    if mode == 'PN':
        x = x - col_mean
        rownorm_mean = jnp.sqrt(1e-6 + (x ** 2).sum(axis=1).mean())
        x = scale * x / rownorm_mean
    if mode == 'PN-SI':
        x = x - col_mean
        rownorm_individual = jnp.sqrt(1e-6 + (x ** 2).sum(axis=1, keepdims=True))
        x = scale * x / rownorm_individual
    if mode == 'PN-SCS':
        rownorm_individual = jnp.sqrt(1e-6 + (x ** 2).sum(axis=1, keepdims=True))
        x = scale * x / rownorm_individual - col_mean
    return x


if __name__ == "__main__":
    # PairNorm has no learnable parameters; only mode/scale hyperparameters.
    key = jax.random.PRNGKey(0)
    # (num_nodes, num_features) node-feature matrices after a graph conv.
    cases = [
        ((64, 32), None),    # small: fused single-pass (whole array in VMEM)
        ((300, 200), 128),   # forces the tiled two-pass path: ragged last row
                             # tile, non-multiple-of-128 feature dim, odd tile
                             # count across the 2-way core split, Buffered(3)
    ]
    for (n, d), block_rows in cases:
        key, sub = jax.random.split(key)
        x = jax.random.normal(sub, (n, d), dtype=jnp.float32)
        for mode in ['None', 'PN', 'PN-SI', 'PN-SCS']:
            out = pairnorm(x, mode=mode, scale=1.0, block_rows=block_rows)
            out = jax.block_until_ready(out)
            ref = _pairnorm_ref(x, mode=mode, scale=1.0)
            if not jnp.allclose(out, ref, atol=1e-5, rtol=1e-4):
                max_err = float(jnp.max(jnp.abs(out - ref)))
                raise AssertionError(
                    f"mismatch for shape {(n, d)} mode {mode}: max_err={max_err}")
    print("KERNEL_OK")
</pallas_src>

<mosaic_0001>
module attributes {stable_mosaic.version = 11 : i64} {
  func.func @_pairnorm_fused_kernel(%arg0: memref<64x32xf32, #tpu.memory_space<vmem>>, %arg1: memref<64x32xf32, #tpu.memory_space<vmem>>) attributes {dimension_semantics = [], scalar_prefetch = 0 : i64, scratch_operands = 0 : i64, tpu.core_type = #tpu.core_type<tc>} {
    %c0 = arith.constant 0 : index
    %c0_0 = arith.constant 0 : index
    %0 = vector.load %arg0[%c0, %c0_0] : memref<64x32xf32, #tpu.memory_space<vmem>>, vector<64x32xf32>
    %cst = arith.constant dense<0.000000e+00> : vector<32xf32>
    %1 = vector.multi_reduction <add>, %0, %cst [0] : vector<64x32xf32> to vector<32xf32>
    %2 = vector.shape_cast %1 : vector<32xf32> to vector<1x32xf32>
    %cst_1 = arith.constant 1.562500e-02 : f32
    %3 = vector.broadcast %cst_1 : f32 to vector<1x32xf32>
    %4 = arith.mulf %2, %3 : vector<1x32xf32>
    %5 = vector.broadcast %4 : vector<1x32xf32> to vector<64x32xf32>
    %6 = arith.subf %0, %5 : vector<64x32xf32>
    %7 = arith.mulf %6, %6 : vector<64x32xf32>
    %8 = vector.shape_cast %7 : vector<64x32xf32> to vector<1x64x32xf32>
    %cst_2 = arith.constant dense<0.000000e+00> : vector<1xf32>
    %9 = vector.multi_reduction <add>, %8, %cst_2 [1, 2] : vector<1x64x32xf32> to vector<1xf32>
    %10 = vector.shape_cast %9 : vector<1xf32> to vector<1x1x1xf32>
    %11 = vector.extract %10[0, 0, 0] : f32 from vector<1x1x1xf32>
    %cst_3 = arith.constant 1.562500e-02 : f32
    %12 = arith.mulf %11, %cst_3 : f32
    %cst_4 = arith.constant 9.99999997E-7 : f32
    %13 = arith.addf %cst_4, %12 : f32
    %14 = math.rsqrt %13 : f32
    %cst_5 = arith.constant 1.000000e+00 : f32
    %15 = arith.mulf %cst_5, %14 : f32
    %16 = vector.broadcast %15 : f32 to vector<64x32xf32>
    %17 = arith.mulf %16, %6 : vector<64x32xf32>
    %c0_6 = arith.constant 0 : index
    %c0_7 = arith.constant 0 : index
    %18 = vector.load %arg1[%c0_6, %c0_7] : memref<64x32xf32, #tpu.memory_space<vmem>>, vector<64x32xf32>
    tpu.vector_store %arg1[%c0_6, %c0_7], %17 {strides = array<i32>} : memref<64x32xf32, #tpu.memory_space<vmem>>, vector<64x32xf32>,
    return
  }
}

</mosaic_0001>

<bundles_post_ra>
// kernel: tpu_custom_call.1
= control target key start
LH: loop header
LB: loop body
LE: loop exit
PB: predicated region body
PF: predicated region fallthrough
CT: control target
= control target key end

     0   :  { %vm16_vm0 = vcmask 261120   ;;  %s193_s0 = inlined_call_operand.vmem [shape: f32[64,32], index: 0, kind: input, shape index: {}]   ;;  %s194_s1 = inlined_call_operand.vmem [shape: f32[64,32], index: 1, kind: output, shape index: {}]  }
   0x1   :  { %v8_v0 = vld [vmem:[%s193_s0] sm:$0xff]  ;;  %v9_v1 = vld [vmem:[%s193_s0 + $0x8] sm:$0xff]  ;;  %v10_v2 = vld [vmem:[%s193_s0 + $0x10] sm:$0xff] }
   0x2   :  { %v11_v3 = vld [vmem:[%s193_s0 + $0x18] sm:$0xff]  ;;  %v17_v4 = vsel %vm16_vm0, %v8_v0, 0.0  ;;  %v18_v5 = vsel %vm16_vm0, %v9_v1, 0.0  ;;  %v20_v6 = vsel %vm16_vm0, %v10_v2, 0.0  ;;  %v12_v7 = vld [vmem:[%s193_s0 + $0x20] sm:$0xff]  ;;  %v13_v10 = vld [vmem:[%s193_s0 + $0x28] sm:$0xff] }
   0x3   :  { %v19_v8 = vadd.f32 %v18_v5, %v17_v4  ;;  %v22_v9 = vsel %vm16_vm0, %v11_v3, 0.0  ;;  %v24_v12 = vsel %vm16_vm0, %v12_v7, 0.0  ;;  %v14_v13 = vld [vmem:[%s193_s0 + $0x30] sm:$0xff]  ;;  %v26_v15 = vsel %vm16_vm0, %v13_v10, 0.0  ;;  %v15_v16 = vld [vmem:[%s193_s0 + $0x38] sm:$0xff] }
   0x4   :  { %v28_v18 = vsel %vm16_vm0, %v14_v13, 0.0  ;;  %v30_v20 = vsel %vm16_vm0, %v15_v16, 0.0 }
   0x5   :  { %v21_v11 = vadd.f32 %v20_v6, %v19_v8 }
   0x7   :  { %v23_v14 = vadd.f32 %v22_v9, %v21_v11 }
   0x9   :  { %v25_v17 = vadd.f32 %v24_v12, %v23_v14 }
   0xb   :  { %v27_v19 = vadd.f32 %v26_v15, %v25_v17 }
   0xd   :  { %v29_v21 = vadd.f32 %v28_v18, %v27_v19 }
   0xf   :  { %v31_v22 = vadd.f32 %v30_v20, %v29_v21 }
  0x11   :  { %v32_v23 = vrot.slane %v31_v22, 4 }
  0x13   :  { %v33_v24 = vadd.f32 %v32_v23, %v31_v22 }
  0x15   :  { %v34_v25 = vrot.slane %v33_v24, 2 }
  0x17   :  { %v35_v26 = vadd.f32 %v34_v25, %v33_v24 }
  0x19   :  { %v36_v27 = vrot.slane %v35_v26, 1 }
  0x1b   :  { %v37_v28 = vadd.f32 %v36_v27, %v35_v26 }
  0x1d   :  { %v38_v29 = vmul.f32 0.015625, %v37_v28 }
  0x1f   :  { %v39_v30 = vsub.f32 %v8_v0, %v38_v29  ;;  %v40_v31 = vsub.f32 %v9_v1, %v38_v29  ;;  %v41_v32 = vsub.f32 %v10_v2, %v38_v29  ;;  %v42_v33 = vsub.f32 %v11_v3, %v38_v29 }
  0x20   :  { %v43_v34 = vsub.f32 %v12_v7, %v38_v29  ;;  %v44_v35 = vsub.f32 %v13_v10, %v38_v29  ;;  %v45_v40 = vsub.f32 %v14_v13, %v38_v29  ;;  %v46_v46 = vsub.f32 %v15_v16, %v38_v29 }
  0x21   :  { %v47_v36 = vmul.f32 %v39_v30, %v39_v30  ;;  %v48_v37 = vmul.f32 %v40_v31, %v40_v31  ;;  %v49_v38 = vmul.f32 %v41_v32, %v41_v32  ;;  %v50_v39 = vmul.f32 %v42_v33, %v42_v33 }
  0x22   :  { %v51_v41 = vmul.f32 %v43_v34, %v43_v34  ;;  %v52_v47 = vmul.f32 %v44_v35, %v44_v35  ;;  %v53_v50 = vmul.f32 %v45_v40, %v45_v40  ;;  %v54_v53 = vmul.f32 %v46_v46, %v46_v46 }
  0x23   :  { %v55_v42 = vsel %vm16_vm0, %v47_v36, 0.0  ;;  %v56_v43 = vsel %vm16_vm0, %v48_v37, 0.0  ;;  %v58_v44 = vsel %vm16_vm0, %v49_v38, 0.0  ;;  %v60_v48 = vsel %vm16_vm0, %v50_v39, 0.0 }
  0x24   :  { %v57_v45 = vadd.f32 %v56_v43, %v55_v42  ;;  %v62_v51 = vsel %vm16_vm0, %v51_v41, 0.0  ;;  %v64_v54 = vsel %vm16_vm0, %v52_v47, 0.0  ;;  %v66_v56 = vsel %vm16_vm0, %v53_v50, 0.0 }
  0x25   :  { %v68_v58 = vsel %vm16_vm0, %v54_v53, 0.0 }
  0x26   :  { %v59_v49 = vadd.f32 %v58_v44, %v57_v45 }
  0x28   :  { %v61_v52 = vadd.f32 %v60_v48, %v59_v49 }
  0x2a   :  { %v63_v55 = vadd.f32 %v62_v51, %v61_v52 }
  0x2c   :  { %v65_v57 = vadd.f32 %v64_v54, %v63_v55 }
  0x2e   :  { %v67_v59 = vadd.f32 %v66_v56, %v65_v57 }
  0x30   :  { %v69_v60 = vadd.f32 %v68_v58, %v67_v59 }
  0x32   :  { %70 = vadd.xlane.f32.xlu0 %v69_v60 }
  0xbf   :  { %v71_v61 = vpop.xlane.xlu0 %70 }
  0xc0   :  { %v72_v62 = vrot.slane %v71_v61, 4 }
  0xc2   :  { %v73_v63 = vadd.f32 %v72_v62, %v71_v61 }
  0xc4   :  { %v74_v0 = vrot.slane %v73_v63, 2 }
  0xc6   :  { %v75_v1 = vadd.f32 %v74_v0, %v73_v63 }
  0xc8   :  { %v76_v2 = vrot.slane %v75_v1, 1 }
  0xca   :  { %v77_v3 = vadd.f32 %v76_v2, %v75_v1 }
  0xcc   :  { %105 = vpush %v77_v3 }
  0xfd   :  { %s106_s0 = spop %105 }
  0xfe   :  { %s79_s22 = smul.f32 0.015625, %s106_s0 }
 0x100   :  { %s80_s23 = sadd.f32 1e-06, %s79_s22 }
 0x102   :  { %v81_v4 = vstv %s80_s23 }
 0x103   :  { %109 = vrsqrt.f32 %v81_v4 }
 0x10d   :  { %v110_v5 = vpop.eup %109 }
 0x10e   :  { %107 = vpush %v110_v5 }
 0x13f   :  { %s108_s24 = spop %107 }
 0x140   :  { %v84_v6 = vstv %s108_s24 }
 0x141   :  { %v85_v7 = vmul.f32 %v84_v6, %v39_v30  ;;  %v86_v8 = vmul.f32 %v84_v6, %v40_v31  ;;  %v87_v9 = vmul.f32 %v84_v6, %v41_v32  ;;  %v88_v10 = vmul.f32 %v84_v6, %v42_v33 }
 0x142   :  { %v89_v11 = vmul.f32 %v84_v6, %v43_v34  ;;  %v90_v12 = vmul.f32 %v84_v6, %v44_v35  ;;  %v91_v13 = vmul.f32 %v84_v6, %v45_v40  ;;  %v92_v14 = vmul.f32 %v84_v6, %v46_v46 }
 0x143   :  { %93 = vst.msk [vmem:[%s194_s1] sm:$0xff] %vm16_vm0, %v85_v7  ;;  %94 = vst.msk [vmem:[%s194_s1 + $0x8] sm:$0xff] %vm16_vm0, %v86_v8 }
 0x144   :  { %95 = vst.msk [vmem:[%s194_s1 + $0x10] sm:$0xff] %vm16_vm0, %v87_v9  ;;  %96 = vst.msk [vmem:[%s194_s1 + $0x18] sm:$0xff] %vm16_vm0, %v88_v10 }
 0x145   :  { %97 = vst.msk [vmem:[%s194_s1 + $0x20] sm:$0xff] %vm16_vm0, %v89_v11  ;;  %98 = vst.msk [vmem:[%s194_s1 + $0x28] sm:$0xff] %vm16_vm0, %v90_v12 }
 0x146   :  { %99 = vst.msk [vmem:[%s194_s1 + $0x30] sm:$0xff] %vm16_vm0, %v91_v13  ;;  %100 = vst.msk [vmem:[%s194_s1 + $0x38] sm:$0xff] %vm16_vm0, %v92_v14 }

</bundles_post_ra>
